<compile_context>
chip_gen: v6e
topology: v6e:2x2x1
jax: 0.10.0
libtpu: 0.0.40
codegen_flags: <defaults>
</compile_context>

<pallas_src>
import functools

import jax
import jax.numpy as jnp
from jax.experimental import pallas as pl
from jax.experimental.pallas import tpu as pltpu


# --------------------------------------------------------------------------- #
# kernel
# --------------------------------------------------------------------------- #
def _dws_kernel(x_ref, *rest, has_edges, num_length_tiles, bf16_mxu):
    # x_ref : (CE, TL)          CE = NB*C merged (sample, channel) rows
    # edges : (NG*nLT, CE, 2)   resident halo columns (only when length tiled)
    # dw_w  : (CE, 3)           depthwise taps (tiled over the NB samples)
    # pw_w  : (OE, CE)          block-diagonal pointwise weight, OE = NB*nout
    # bias  : (OE, 1)           pointwise bias with the depthwise bias folded in
    # o_ref : (OE, TL)
    if has_edges:
        edges_ref, dww_ref, pww_ref, b_ref, o_ref = rest
    else:
        edges_ref = None
        dww_ref, pww_ref, b_ref, o_ref = rest

    x = x_ref[...]
    ce, tl = x.shape
    w = dww_ref[...]
    pw = pww_ref[...]
    w0, w1, w2 = w[:, 0:1], w[:, 1:2], w[:, 2:3]

    def halo_cols():
        if has_edges:
            e = edges_ref[pl.program_id(0) * num_length_tiles + pl.program_id(1)]
            return e[:, 0:1], e[:, 1:2]
        z = jnp.zeros((ce, 1), x.dtype)
        return z, z

    if tl % 128 == 0:
        # aligned tile: shifted taps from two XLU rotations (the XLU slot is
        # otherwise idle); the two wrapped-around boundary lanes are repaired
        # on the output below -- no full-tile iota/compare/select passes.
        prev = pltpu.roll(x, shift=1, axis=1)
        nxt = pltpu.roll(x, shift=tl - 1, axis=1)
        fix_boundary = True
    else:
        # tiny tile (whole sample shorter than 128 lanes): build taps directly.
        e0, e1 = halo_cols()
        prev = jnp.concatenate([e0, x[:, :tl - 1]], axis=1)
        nxt = jnp.concatenate([x[:, 1:], e1], axis=1)
        fix_boundary = False

    # depthwise conv (kernel=3, groups=C); its bias is folded into b_ref.
    dw = w0 * prev + w1 * x + w2 * nxt                          # (CE, TL)

    # pointwise 1x1 conv: block-diagonal channel mix on the MXU.
    if bf16_mxu:
        y = jnp.dot(pw.astype(jnp.bfloat16), dw.astype(jnp.bfloat16),
                    preferred_element_type=jnp.float32)
    else:
        y = jnp.dot(pw, dw, preferred_element_type=jnp.float32)
    o_ref[...] = (y + b_ref[...]).astype(o_ref.dtype)

    if fix_boundary:
        # lanes 0 / TL-1 of `dw` used wrapped-around inputs; the pointwise conv
        # is linear, so fix only the two affected output columns with a tiny
        # (OE, 2) correction and two 1-lane masked RMW stores.
        e0, e1 = halo_cols()
        d0 = w0 * (e0 - x_ref[:, tl - 1:tl])        # correction to dw[:, 0]
        d1 = w2 * (e1 - x_ref[:, 0:1])              # correction to dw[:, tl-1]
        dy = jnp.dot(pw, jnp.concatenate([d0, d1], axis=1),
                     preferred_element_type=jnp.float32)        # (OE, 2)
        o_ref[:, 0:1] = (o_ref[:, 0:1] + dy[:, 0:1]).astype(o_ref.dtype)
        o_ref[:, tl - 1:tl] = (o_ref[:, tl - 1:tl] + dy[:, 1:2]).astype(o_ref.dtype)


# --------------------------------------------------------------------------- #
# wrapper helpers
# --------------------------------------------------------------------------- #
def _divisors_desc(n):
    return [d for d in range(n, 0, -1) if n % d == 0]


def _length_tile_candidates(L):
    cands = [L]
    for t in range(128, L, 128):          # lane-dense sub-tiles only
        if L % t == 0:
            cands.append(t)
    return sorted(set(cands), reverse=True)


def _pick_tiling(N, C, nout, L, itemsize, max_block_bytes):
    """Largest (samples-per-block NB, length-tile TL) fitting the VMEM budget."""
    per_elem = (C + nout) * itemsize      # in + out bytes per (sample, lane)
    cands = _length_tile_candidates(L)
    for tl in cands:                      # descending
        if per_elem * tl <= max_block_bytes:
            nb_cap = max(1, max_block_bytes // (per_elem * tl))
            nb = next(d for d in _divisors_desc(N) if d <= nb_cap)
            return nb, tl
    # TODO(synk): very long L with no 128-multiple divisor may exceed VMEM here.
    return 1, cands[-1]


def _block_spec(shape, index_map, buffers=None):
    """BlockSpec with optional deeper pipelining (falls back if unsupported)."""
    if buffers is not None and buffers > 2 and hasattr(pl, "Buffered"):
        try:
            return pl.BlockSpec(shape, index_map, pipeline_mode=pl.Buffered(buffers))
        except TypeError:
            pass
    return pl.BlockSpec(shape, index_map)


# --------------------------------------------------------------------------- #
# public entry point
# --------------------------------------------------------------------------- #
def dws_conv1d(x, dw_w, dw_b, pw_w, pw_b, *, use_bf16_matmul=False,
               max_block_bytes=None):
    """Depthwise-separable Conv1d (kernel=3, padding=1, groups=nin). x: (N, C, L)."""
    N, C, L = x.shape
    nout, nmid, _ = pw_w.shape
    # TODO(synk): kernels_per_layer > 1 (channel-expanding depthwise) is not
    # implemented; the module default kernels_per_layer=1 is covered.
    assert nmid == dw_w.shape[0] == C
    itemsize = jnp.dtype(x.dtype).itemsize

    # --- VMEM-aware limits (v5e/v6e: 128 MiB, v7x: 64 MiB per core) ----------
    try:
        vmem_cap = int(pltpu.get_tpu_info().vmem_capacity_bytes)
    except Exception:
        vmem_cap = 64 * 1024 * 1024       # conservative fallback (v7x per core)
    vmem_limit = int(min(vmem_cap // 2, 40 * 1024 * 1024))
    if max_block_bytes is None:
        # x + o blocks per step; both are (up to) triple-buffered below.
        max_block_bytes = vmem_limit // 8

    NB, TL = _pick_tiling(N, C, nout, L, itemsize, max_block_bytes)
    NG, nLT = N // NB, L // TL
    # If everything collapsed into a single grid step and the sample is long,
    # split the length so both v7x TensorCores get work (both axes "parallel").
    if NG * nLT == 1 and L >= 1024 and L % 256 == 0:
        TL, nLT = L // 2, 2

    CE, OE = NB * C, NB * nout
    nsteps = NG * nLT
    has_edges = nLT > 1
    deep = 3 if nsteps >= 3 else None

    # --- batch folding: pure reshape, samples ride the sublane axis ----------
    xg = x.reshape(NG, CE, L)

    # --- weights --------------------------------------------------------------
    dw_w2 = dw_w[:, 0, :]                                    # (C, 3)
    pw_w2 = pw_w[:, :, 0]                                    # (nout, C)
    # fold the depthwise bias into the pointwise bias (exact: pointwise linear)
    comb_b = jnp.sum(pw_w2 * dw_b[None, :], axis=1, keepdims=True) + pw_b[:, None]
    dw_wm = jnp.tile(dw_w2, (NB, 1))                         # (CE, 3)
    pw_bd = jnp.einsum("bd,oc->bodc", jnp.eye(NB, dtype=pw_w2.dtype),
                       pw_w2).reshape(OE, CE)                # block-diagonal mix
    b_m = jnp.tile(comb_b, (NB, 1))                          # (OE, 1)

    inputs = [xg]
    in_specs = [_block_spec((pl.Squeezed(), CE, TL), lambda i, j: (i, 0, j),
                            buffers=deep)]

    # --- halo columns, only when the length axis is tiled ---------------------
    #   edges[g*nLT + j, :, 0] = xg[g, :, j*TL - 1]   (0 at the left boundary)
    #   edges[g*nLT + j, :, 1] = xg[g, :, (j+1)*TL]   (0 at the right boundary)
    if has_edges:
        zcol = jnp.zeros((NG, CE, 1), x.dtype)
        left = jnp.concatenate([zcol, xg[:, :, TL - 1::TL][:, :, :nLT - 1]], axis=2)
        right = jnp.concatenate([xg[:, :, TL::TL], zcol], axis=2)
        edges = jnp.transpose(jnp.stack([left, right], axis=-1),
                              (0, 2, 1, 3)).reshape(NG * nLT, CE, 2)
        inputs.append(edges)
        # whole array resident in VMEM (constant index_map -> fetched once),
        # indexed with program_ids in the kernel: no per-step 32 B mini-DMA.
        in_specs.append(pl.BlockSpec((NG * nLT, CE, 2), lambda i, j: (0, 0, 0)))

    inputs += [dw_wm, pw_bd, b_m]
    in_specs += [pl.BlockSpec((CE, 3), lambda i, j: (0, 0)),
                 pl.BlockSpec((OE, CE), lambda i, j: (0, 0)),
                 pl.BlockSpec((OE, 1), lambda i, j: (0, 0))]
    out_spec = _block_spec((pl.Squeezed(), OE, TL), lambda i, j: (i, 0, j),
                           buffers=deep)

    kernel = functools.partial(_dws_kernel, has_edges=has_edges,
                               num_length_tiles=nLT, bf16_mxu=use_bf16_matmul)

    cost = pl.CostEstimate(
        flops=N * L * (5 * C + 2 * nout * C + nout),
        transcendentals=0,
        bytes_accessed=itemsize * (N * C * L + N * nout * L)
        + 4 * (C * 3 + nout * C + nout + (N * nLT * C * 2 if has_edges else 0)),
    )

    # TODO(synk): if the surrounding model tolerates it, emit a bf16 output
    # here to halve HBM writeback / store-slot pressure (mainly helps v5e).
    out = pl.pallas_call(
        kernel,
        out_shape=jax.ShapeDtypeStruct((NG, OE, L), x.dtype),
        grid_spec=pltpu.PrefetchScalarGridSpec(
            num_scalar_prefetch=0,
            grid=(NG, nLT),
            in_specs=in_specs,
            out_specs=out_spec,
        ),
        compiler_params=pltpu.CompilerParams(
            dimension_semantics=("parallel", "parallel"),
            vmem_limit_bytes=vmem_limit,
        ),
        cost_estimate=cost,
    )(*inputs)
    return out.reshape(N, nout, L)


# --------------------------------------------------------------------------- #
# plain-JAX reference (exact f32, mirrors PyTorch DWSConv1D.forward)
# --------------------------------------------------------------------------- #
def reference(x, dw_w, dw_b, pw_w, pw_b):
    N, C, L = x.shape
    xp = jnp.pad(x, ((0, 0), (0, 0), (1, 1)))
    dw = sum(dw_w[None, :, 0, k][:, :, None] * xp[:, :, k:k + L]
             for k in range(3)) + dw_b[None, :, None]
    y = jnp.sum(pw_w[None, :, :, 0, None] * dw[:, None, :, :], axis=2)
    return y + pw_b[None, :, None]


if __name__ == "__main__":
    # Module config: DWSConv1D(nin=4, nout=8, kernels_per_layer=1,
    #                          kernel_depth=3, padding_depth=1)
    nin, nout_, kpl, kd = 4, 8, 1, 3

    key = jax.random.PRNGKey(0)
    k_x, k_x2, k_x3, k_x4, k_dw, k_dwb, k_pw, k_pwb = jax.random.split(key, 8)

    # Deterministic kaiming_normal_-style init (gain=sqrt(2), mode=fan_in).
    dw_fan_in = 1 * kd
    pw_fan_in = nin * kpl * 1
    dw_w = jax.random.normal(k_dw, (nin * kpl, 1, kd), jnp.float32) \
        * jnp.sqrt(2.0 / dw_fan_in)
    pw_w = jax.random.normal(k_pw, (nout_, nin * kpl, 1), jnp.float32) \
        * jnp.sqrt(2.0 / pw_fan_in)
    dw_b = jax.random.uniform(k_dwb, (nin * kpl,), jnp.float32,
                              -1.0 / jnp.sqrt(dw_fan_in), 1.0 / jnp.sqrt(dw_fan_in))
    pw_b = jax.random.uniform(k_pwb, (nout_,), jnp.float32,
                              -1.0 / jnp.sqrt(pw_fan_in), 1.0 / jnp.sqrt(pw_fan_in))

    def check(xin, **kw):
        out = jax.block_until_ready(dws_conv1d(xin, dw_w, dw_b, pw_w, pw_b, **kw))
        ref = reference(xin, dw_w, dw_b, pw_w, pw_b)
        assert out.shape == ref.shape
        err = jnp.max(jnp.abs(out - ref))
        assert jnp.allclose(out, ref, rtol=1e-5, atol=1e-5), f"max err {err}"

    # 1) module-sized input (2, 4, 16): single fused step, tiny-tile (concat) path
    check(jax.random.normal(k_x, (2, nin, 16), jnp.float32))
    # 2) whole batch folded + length split across the two length tiles (halo path)
    check(jax.random.normal(k_x2, (2, nin, 2048), jnp.float32))
    # 3) 128-aligned whole-sample tiles, 4 samples folded into one grid step
    check(jax.random.normal(k_x3, (4, nin, 512), jnp.float32))
    # 4) forced small tiles: multi-step grid, 3-deep buffering, resident halos
    check(jax.random.normal(k_x4, (2, nin, 1024), jnp.float32),
          max_block_bytes=16 * 1024)

    print("KERNEL_OK")
</pallas_src>

<mosaic_0001>
module attributes {stable_mosaic.version = 11 : i64} {
  func.func @_dws_kernel(%arg0: i32, %arg1: i32, %arg2: memref<1x8x16xf32, #tpu.memory_space<vmem>>, %arg3: memref<8x3xf32, #tpu.memory_space<vmem>>, %arg4: memref<16x8xf32, #tpu.memory_space<vmem>>, %arg5: memref<16x1xf32, #tpu.memory_space<vmem>>, %arg6: memref<1x16x16xf32, #tpu.memory_space<vmem>>) attributes {dimension_semantics = [#tpu.dimension_semantics<parallel>, #tpu.dimension_semantics<parallel>], iteration_bounds = array<i64: 1, 1>, scalar_prefetch = 0 : i64, scratch_operands = 0 : i64, tpu.core_type = #tpu.core_type<tc>, window_params = [{transform_indices = @transform_0, window_bounds = array<i64: 1, 8, 16>}, {pipeline_mode = #tpu.pipeline_mode<synchronous>, transform_indices = @transform_1, window_bounds = array<i64: 8, 3>}, {pipeline_mode = #tpu.pipeline_mode<synchronous>, transform_indices = @transform_2, window_bounds = array<i64: 16, 8>}, {pipeline_mode = #tpu.pipeline_mode<synchronous>, transform_indices = @transform_3, window_bounds = array<i64: 16, 1>}, {transform_indices = @transform_4, window_bounds = array<i64: 1, 16, 16>}]} {
    %c0 = arith.constant 0 : index
    %c0_0 = arith.constant 0 : index
    %c0_1 = arith.constant 0 : index
    %0 = vector.load %arg2[%c0, %c0_0, %c0_1] : memref<1x8x16xf32, #tpu.memory_space<vmem>>, vector<1x8x16xf32>
    %1 = vector.shape_cast %0 : vector<1x8x16xf32> to vector<8x16xf32>
    %c0_2 = arith.constant 0 : index
    %c0_3 = arith.constant 0 : index
    %2 = vector.load %arg3[%c0_2, %c0_3] : memref<8x3xf32, #tpu.memory_space<vmem>>, vector<8x3xf32>
    %c0_4 = arith.constant 0 : index
    %c0_5 = arith.constant 0 : index
    %3 = vector.load %arg4[%c0_4, %c0_5] : memref<16x8xf32, #tpu.memory_space<vmem>>, vector<16x8xf32>
    %4 = vector.extract_strided_slice %2 {offsets = [0, 0], sizes = [8, 1], strides = [1, 1]} : vector<8x3xf32> to vector<8x1xf32>
    %5 = vector.extract_strided_slice %2 {offsets = [0, 1], sizes = [8, 1], strides = [1, 1]} : vector<8x3xf32> to vector<8x1xf32>
    %6 = vector.extract_strided_slice %2 {offsets = [0, 2], sizes = [8, 1], strides = [1, 1]} : vector<8x3xf32> to vector<8x1xf32>
    %cst = arith.constant 0.000000e+00 : f32
    %7 = vector.broadcast %cst : f32 to vector<8x1xf32>
    %8 = vector.extract_strided_slice %1 {offsets = [0, 0], sizes = [8, 15], strides = [1, 1]} : vector<8x16xf32> to vector<8x15xf32>
    %9 = tpu.concatenate %7, %8 in 1 : vector<8x1xf32>, vector<8x15xf32> -> vector<8x16xf32>
    %10 = vector.extract_strided_slice %1 {offsets = [0, 1], sizes = [8, 15], strides = [1, 1]} : vector<8x16xf32> to vector<8x15xf32>
    %11 = tpu.concatenate %10, %7 in 1 : vector<8x15xf32>, vector<8x1xf32> -> vector<8x16xf32>
    %12 = vector.broadcast %4 : vector<8x1xf32> to vector<8x16xf32>
    %13 = arith.mulf %12, %9 : vector<8x16xf32>
    %14 = vector.broadcast %5 : vector<8x1xf32> to vector<8x16xf32>
    %15 = arith.mulf %14, %1 : vector<8x16xf32>
    %16 = arith.addf %13, %15 : vector<8x16xf32>
    %17 = vector.broadcast %6 : vector<8x1xf32> to vector<8x16xf32>
    %18 = arith.mulf %17, %11 : vector<8x16xf32>
    %19 = arith.addf %16, %18 : vector<8x16xf32>
    %cst_6 = arith.constant dense<0.000000e+00> : vector<16x16xf32>
    %20 = tpu.matmul %3, %19, %cst_6 {dimension_numbers = #tpu.dot_dimension_numbers<[1], [0], [0], [1], [0, 0, 1, 1], [], []>} : vector<16x8xf32>, vector<8x16xf32>, vector<16x16xf32> -> vector<16x16xf32>
    %c0_7 = arith.constant 0 : index
    %c0_8 = arith.constant 0 : index
    %21 = vector.load %arg5[%c0_7, %c0_8] : memref<16x1xf32, #tpu.memory_space<vmem>>, vector<16x1xf32>
    %22 = vector.broadcast %21 : vector<16x1xf32> to vector<16x16xf32>
    %23 = arith.addf %20, %22 : vector<16x16xf32>
    %c0_9 = arith.constant 0 : index
    %c0_10 = arith.constant 0 : index
    %c0_11 = arith.constant 0 : index
    %24 = vector.load %arg6[%c0_9, %c0_10, %c0_11] : memref<1x16x16xf32, #tpu.memory_space<vmem>>, vector<1x16x16xf32>
    %25 = vector.shape_cast %24 : vector<1x16x16xf32> to vector<16x16xf32>
    %26 = vector.shape_cast %23 : vector<16x16xf32> to vector<1x16x16xf32>
    tpu.vector_store %arg6[%c0_9, %c0_10, %c0_11], %26 {strides = array<i32>} : memref<1x16x16xf32, #tpu.memory_space<vmem>>, vector<1x16x16xf32>,
    return
  }
  func.func @transform_0(%arg0: i32, %arg1: i32) -> (i32, i32, i32) {
    %c0_i32 = arith.constant 0 : i32
    %c0_i32_0 = arith.constant 0 : i32
    return %arg0, %c0_i32, %arg1 : i32, i32, i32
  }
  func.func @transform_1(%arg0: i32, %arg1: i32) -> (i32, i32) {
    %c0_i32 = arith.constant 0 : i32
    %c0_i32_0 = arith.constant 0 : i32
    %c0_i32_1 = arith.constant 0 : i32
    return %c0_i32, %c0_i32_0 : i32, i32
  }
  func.func @transform_2(%arg0: i32, %arg1: i32) -> (i32, i32) {
    %c0_i32 = arith.constant 0 : i32
    %c0_i32_0 = arith.constant 0 : i32
    %c0_i32_1 = arith.constant 0 : i32
    return %c0_i32, %c0_i32_0 : i32, i32
  }
  func.func @transform_3(%arg0: i32, %arg1: i32) -> (i32, i32) {
    %c0_i32 = arith.constant 0 : i32
    %c0_i32_0 = arith.constant 0 : i32
    %c0_i32_1 = arith.constant 0 : i32
    return %c0_i32, %c0_i32_0 : i32, i32
  }
  func.func @transform_4(%arg0: i32, %arg1: i32) -> (i32, i32, i32) {
    %c0_i32 = arith.constant 0 : i32
    %c0_i32_0 = arith.constant 0 : i32
    return %arg0, %c0_i32, %arg1 : i32, i32, i32
  }
}

</mosaic_0001>

<bundles_post_ra>
// kernel: tpu_custom_call.1
= control target key start
LH: loop header
LB: loop body
LE: loop exit
PB: predicated region body
PF: predicated region fallthrough
CT: control target
= control target key end

     0   :  { %v209_v1 = vmov 2   ;;  %v210_v2 = vmov 0   ;;  %s265_s0 = inlined_call_operand.vmem [shape: f32[1,8,16], index: 0, kind: input, shape index: {}]   ;;  %s266_s1 = inlined_call_operand.vmem [shape: f32[8,3], index: 1, kind: input, shape index: {}]   ;;  %s267_s2 = inlined_call_operand.vmem [shape: f32[16,8], index: 2, kind: input, shape index: {}]   ;;  %s268_s3 = inlined_call_operand.vmem [shape: f32[16,1], index: 3, kind: input, shape index: {}]   ;;  %s269_s4 = inlined_call_operand.hbm [shape: f32[1,16,16], index: 4, kind: output, shape index: {}]  }
   0x1   :  { %v19_v0 = vld [vmem:[%s266_s1] sm:$0xff]  ;;  %184 = vset.pattern.permute.xlu1 %v209_v1  ;;  %182 = vset.pattern.permute.xlu0 %v210_v2 }
   0x2   :  { %9 = vsyncpa [#allocation3], 0  ;;  %46 = vperm.xlu1 %184, %v19_v0   ;;  %35 = vperm.xlu0 %182, %v19_v0   ;;  %v18_v3 = vld [vmem:[%s265_s0] sm:$0xff]  ;;  %v211_v4 = vmov 1   ;;  %s212_s19 = smov 1   ;;  %s213_s20 = smov 127  }
   0x3   :  { %v20_v5 = vld [vmem:[%s267_s2] sm:$0xff]  ;;  %vm63_vm0 = vcmask 64512   ;;  %v52_v6 = vld [vmem:[%s268_s3 + $0x8] sm:$0xff]  ;;  %vm26_vm1 = vcmask 7168   ;;  %vm31_vm2 = vcmask 121856   ;;  %vm145_vm3 = vcmask 130048  }
   0x4   :  { %171 = vmatprep.mubr.msk.f32.mxu0 %vm63_vm0, %v20_v5  ;;  %v51_v7 = vld [vmem:[%s268_s3] sm:$0xff]  ;;  %v21_v20 = vld [vmem:[%s267_s2 + $0x8] sm:$0xff]  ;;  %s214_s3 = smov [#allocation2]  }
   0x5   :  { %s153_s27 = sshll.u32 %s214_s3, 4  ;;  %s154_s27 = int_to_ptr.vmem [resolvable:$true] %s153_s27 }
   0x6   :  { %183 = vset.pattern.permute.xlu0 %v211_v4  ;;  %23 = vrot.lane.b32.xlu1 %v18_v3, %s212_s19  ;;  %s187_s28 = scalar_lea.vmem %s154_s27, 256  ;;  %p192_p1 = scmp.lt.s32.totalorder %s154_s27, %s154_s27 }
   0x7   :  { %40 = vperm.xlu0 %183, %v19_v0   ;;  %186 = vset.pattern.permute.xlu1 %v210_v2  ;;  %p188_p0 = scmp.ne.s32.totalorder %s154_s27, %s187_s28  ;;  %p193_p2 = scmp.lt.s32.totalorder %s187_s28, %s187_s28 }
   0x9   :  { %p194_p3 = por %p193_p2, %p192_p1 }
   0xa   :  { %28 = vrot.lane.b32.xlu1 %v18_v3, %s213_s20 }
   0xb   :  { %185 = vset.pattern.permute.xlu0 %v210_v2  ;;  %p195_p4 = pnand %p194_p3, %p188_p0 }
   0xc   :  { %55 = vperm.xlu0 %185, %v51_v7  }
   0xe   :  { %60 = vperm.xlu1 %186, %v52_v6  }
  0x7d   :  { %v47_v8 = vpop.permute.xlu1 %46  ;;  %v36_v9 = vpop.permute.xlu0 %35 }
  0x81   :  { %v24_v10 = vpop.permute.xlu1 %23 }
  0x82   :  { %v27_v11 = vsel %vm26_vm1, 0.0, %v24_v10  ;;  %v41_v12 = vpop.permute.xlu0 %40 }
  0x83   :  { %v38_v13 = vmul.f32 %v36_v9, %v27_v11  ;;  %v43_v14 = vmul.f32 %v41_v12, %v18_v3 }
  0x85   :  { %v29_v15 = vpop.permute.xlu1 %28  ;;  %v44_v17 = vadd.f32 %v43_v14, %v38_v13 }
  0x86   :  { %v32_v16 = vsel %vm31_vm2, %v29_v15, 0.0 }
  0x87   :  { %v49_v18 = vmul.f32 %v47_v8, %v32_v16  ;;  %v56_v23 = vpop.permute.xlu0 %55 }
  0x89   :  { %v50_v19 = vadd.f32 %v49_v18, %v44_v17  ;;  %v61_v21 = vpop.permute.xlu1 %60 }
  0x8b   :  { %169 = vmatprep.subr.mxu0 %v50_v19 }
  0x8c   :  { %170 = vmatpush3.msra.mxu0 %v50_v19 }
  0x8d   :  { %172 = vmatmul.mubr.msk.f32.vlgmr.msra.gmra.mxu0 %vm63_vm0, %v21_v20 }
 0x14d   :  { %v173_v22 = vpop.f32.mrf.mxu0 }
 0x14e   :  { %v142_v24 = vadd.f32 %v173_v22, %v61_v21 }
 0x14f   :  { %v136_v25 = vpop.f32.mrf.mxu0 }
 0x150   :  { %147 = vst.msk [vmem:[#allocation2 + $0x8] sm:$0xff] %vm145_vm3, %v142_v24  ;;  %v137_v26 = vadd.f32 %v136_v25, %v56_v23 }
 0x152   :  { %146 = vst.msk [vmem:[#allocation2] sm:$0xff] %vm145_vm3, %v137_v26 }
 0x153   :  { %198 = shalt.err (!%p195_p4)
}
 0x154   :  { %s215_s2 = smov 128   ;;  %s216_s29 = smov 8  }
 0x155   :  { %159 = dma.vmem_to_hbm [thread:$0]  %s154_s27, 256, %s269_s4, [#allocation3], %s215_s2, %s215_s2, %s216_s29  }
 0x156   :  { %207 = dma.done.wait [#allocation3], 256  }
 0x157   :  { %208 = vsyncadd [#allocation3], 4294967040 }
 0x158   :  { %163 = vsyncpa [#allocation3], 1 }

</bundles_post_ra>
